<compile_context>
chip_gen: v6e
topology: v6e:2x2x1
jax: 0.10.0
libtpu: 0.0.40
codegen_flags: <defaults>
</compile_context>

<pallas_src>
import functools

import jax
import jax.numpy as jnp
from jax.experimental import pallas as pl
from jax.experimental.pallas import tpu as pltpu

BN_EPS = 1e-5
LANE = 128


# --------------------------------------------------------------------------- #
# Kernel
# --------------------------------------------------------------------------- #
def _mlp_kernel(x_ref, w1_ref, b1_ref, w2_ref, b2_ref, w3_ref, b3_ref,
                o_ref, h1_ref, acc_ref, *, out_dim, tk):
    """Fused (Linear[+folded BN] -> ReLU) x2 -> Linear.

    Grid: (row tile i ["parallel"], hid-contraction tile k ["arbitrary"]).
      k == 0    : layer-1 (full, K = input_dim is tiny) -> h1 scratch; zero acc.
      every k   : acc += h1[:, k-tile] @ w2[k-tile, :]   (w2 row-tile streamed)
      k == last : h2 = relu(acc + b2); out = h2 @ w3 + b3; write o_ref.
    """
    k = pl.program_id(1)
    wdt = w1_ref.dtype                      # MXU operand dtype (f32 or bf16)

    @pl.when(k == 0)
    def _init():
        h1 = jnp.dot(x_ref[...].astype(wdt), w1_ref[...],
                     preferred_element_type=jnp.float32) + b1_ref[...]
        h1_ref[...] = jnp.maximum(h1, 0.0).astype(h1_ref.dtype)
        acc_ref[...] = jnp.zeros_like(acc_ref)

    off = pl.multiple_of(k * tk, tk)
    acc_ref[...] += jnp.dot(h1_ref[:, pl.ds(off, tk)], w2_ref[...],
                            preferred_element_type=jnp.float32)

    @pl.when(k == pl.num_programs(1) - 1)
    def _finalize():
        h2 = jnp.maximum(acc_ref[...] + b2_ref[...], 0.0)       # f32 epilogue
        out = jnp.dot(h2.astype(wdt), w3_ref[...],
                      preferred_element_type=jnp.float32) + b3_ref[...]
        o_ref[...] = out[:, :out_dim].astype(o_ref.dtype)       # unpadded writeback


# --------------------------------------------------------------------------- #
# Wrapper helpers
# --------------------------------------------------------------------------- #
def _round_up(v, m):
    return (v + m - 1) // m * m


def _fold_bn(w, b, gamma, beta, mean, var, eps=BN_EPS):
    """Fold eval-mode BatchNorm1d into the preceding Linear (all f32, exact)."""
    scale = gamma / jnp.sqrt(var + eps)          # (1, d)
    return w * scale, (b - mean) * scale + beta


def _pad2(a, rows, cols):
    return jnp.pad(a, ((0, rows - a.shape[0]), (0, cols - a.shape[1])))


def _device_kind():
    try:
        return jax.devices()[0].device_kind.lower()
    except Exception:
        return ""


def _const_spec(shape, index_map):
    """Grid-invariant block: single-buffered (constant index_map)."""
    try:
        return pl.BlockSpec(shape, index_map, pipeline_mode=pl.Buffered(1))
    except (TypeError, AttributeError):          # older API without pipeline_mode
        return pl.BlockSpec(shape, index_map)


# --------------------------------------------------------------------------- #
# Forward
# --------------------------------------------------------------------------- #
def mlp_forward(x, params, *, tile_rows=None, compute_dtype=None):
    """Runs the fused MLP Pallas kernel.

    x: [N, input_dim] float32
    params: dict of weights (see init_params); Linear weights already (in, out).
    compute_dtype: MXU operand dtype. None -> bf16 on v6e/v7x, f32 otherwise.
    """
    n, in_dim = x.shape
    hid = params["w1"].shape[1]
    out_dim = params["w3"].shape[1]

    kind = _device_kind()
    is_v7 = "v7" in kind
    if compute_dtype is None:
        compute_dtype = jnp.bfloat16 if ("v6" in kind or is_v7) else jnp.float32
    compute_dtype = jnp.dtype(compute_dtype)

    # ---- wrapper-side precompute: BN folding (exact, f32) ------------------
    w1f, b1f = _fold_bn(params["w1"], params["b1"], params["g1"], params["be1"],
                        params["m1"], params["v1"])
    w2f, b2f = _fold_bn(params["w2"], params["b2"], params["g2"], params["be2"],
                        params["m2"], params["v2"])
    w3f, b3f = params["w3"], params["b3"]

    # ---- pad hidden / output feature dims to lane width for the MXU --------
    hid_p = _round_up(hid, LANE)
    out_p = _round_up(out_dim, LANE)

    w1p = _pad2(w1f, in_dim, hid_p).astype(compute_dtype)
    b1p = _pad2(b1f, 1, hid_p)                       # biases stay f32
    w2p = _pad2(w2f, hid_p, hid_p).astype(compute_dtype)
    b2p = _pad2(b2f, 1, hid_p)
    w3p = _pad2(w3f, hid_p, out_p).astype(compute_dtype)
    b3p = _pad2(b3f, 1, out_p)

    # ---- row tiling ---------------------------------------------------------
    # v5e/v6e (1 TC): single step for small N.  v7x (2 TCs): even tile count.
    if tile_rows is None:
        n_tiles = max(2 if is_v7 else 1, pl.cdiv(n, 1024))
        if is_v7 and n_tiles % 2:
            n_tiles += 1
        tile_rows = _round_up(pl.cdiv(n, n_tiles), 8)
    else:
        tile_rows = _round_up(int(tile_rows), 8)
    n_tiles = pl.cdiv(n, tile_rows)
    if is_v7 and n_tiles > 1 and n_tiles % 2:
        n_tiles += 1                                  # balanced megacore split
    n_pad = n_tiles * tile_rows
    xp = jnp.pad(x, ((0, n_pad - n), (0, 0))) if n_pad != n else x

    # ---- K tiling of the hid_p contraction (layer-2 weight streaming) ------
    tk = max(t for t in (512, 256, 128) if hid_p % t == 0)
    k_tiles = hid_p // tk

    in_specs = [
        pl.BlockSpec((tile_rows, in_dim), lambda i, k: (i, 0)),   # x (row tile)
        _const_spec((in_dim, hid_p), lambda i, k: (0, 0)),        # w1'
        _const_spec((1, hid_p), lambda i, k: (0, 0)),             # b1'
        pl.BlockSpec((tk, hid_p), lambda i, k: (k, 0)),           # w2' (streamed)
        _const_spec((1, hid_p), lambda i, k: (0, 0)),             # b2'
        _const_spec((hid_p, out_p), lambda i, k: (0, 0)),         # w3
        _const_spec((1, out_p), lambda i, k: (0, 0)),             # b3
    ]
    out_spec = pl.BlockSpec((tile_rows, out_dim), lambda i, k: (i, 0))

    scratch_shapes = [
        pltpu.VMEM((tile_rows, hid_p), compute_dtype),   # h1 (layer-1 activations)
        pltpu.VMEM((tile_rows, hid_p), jnp.float32),     # layer-2 f32 accumulator
    ]

    # ---- explicit scoped-VMEM budget ---------------------------------------
    wb = compute_dtype.itemsize
    vmem_needed = (
        2 * tile_rows * in_dim * 4                       # x tile (double-buffered)
        + (in_dim * hid_p + hid_p * out_p) * wb          # w1, w3 (single-buffered)
        + 2 * tk * hid_p * wb                            # w2 tile (double-buffered)
        + (2 * hid_p + out_p) * 4                        # biases
        + 2 * tile_rows * out_dim * 4                    # out tile (double-buffered)
        + tile_rows * hid_p * (wb + 4)                   # h1 + acc scratch
    )
    vmem_limit = min(int(vmem_needed * 1.5) + (1 << 20), 128 << 20)

    # ---- advisory cost estimate (unpadded dims) -----------------------------
    flops = 2 * n * (in_dim * hid + hid * hid + hid * out_dim)
    bytes_accessed = int(
        n * in_dim * 4
        + (in_dim * hid + hid * hid + hid * out_dim) * wb
        + (2 * hid + out_dim) * 4
        + n * out_dim * 4
    )
    cost = pl.CostEstimate(flops=flops, transcendentals=0,
                           bytes_accessed=bytes_accessed)

    kernel = pl.pallas_call(
        functools.partial(_mlp_kernel, out_dim=out_dim, tk=tk),
        out_shape=jax.ShapeDtypeStruct((n_pad, out_dim), x.dtype),
        grid_spec=pltpu.PrefetchScalarGridSpec(
            num_scalar_prefetch=0,
            grid=(n_tiles, k_tiles),
            in_specs=in_specs,
            out_specs=out_spec,
            scratch_shapes=scratch_shapes,
        ),
        compiler_params=pltpu.CompilerParams(
            dimension_semantics=("parallel", "arbitrary"),
            vmem_limit_bytes=vmem_limit,
        ),
        cost_estimate=cost,
    )

    out = kernel(xp, w1p, b1p, w2p, b2p, w3p, b3p)
    return out[:n] if n_pad != n else out


# --------------------------------------------------------------------------- #
# Synthetic params + plain-JAX reference
# --------------------------------------------------------------------------- #
def init_params(key, input_dim, hidden_dim, output_dim):
    """Deterministic synthetic parameter init (shapes match the PyTorch module)."""
    ks = jax.random.split(key, 12)
    f32 = jnp.float32

    def lin(kw, kb, fan_in, fan_out):
        # PyTorch nn.Linear default: U(-1/sqrt(fan_in), 1/sqrt(fan_in))
        bound = 1.0 / jnp.sqrt(f32(fan_in))
        w = jax.random.uniform(kw, (fan_in, fan_out), f32, -bound, bound)  # pre-transposed
        b = jax.random.uniform(kb, (1, fan_out), f32, -bound, bound)
        return w, b

    w1, b1 = lin(ks[0], ks[1], input_dim, hidden_dim)
    w2, b2 = lin(ks[2], ks[3], hidden_dim, hidden_dim)
    w3, b3 = lin(ks[4], ks[5], hidden_dim, output_dim)

    # BatchNorm1d params / running stats (non-trivial deterministic values).
    g1 = 1.0 + 0.1 * jax.random.normal(ks[6], (1, hidden_dim), f32)
    be1 = 0.1 * jax.random.normal(ks[7], (1, hidden_dim), f32)
    m1 = 0.05 * jax.random.normal(ks[8], (1, hidden_dim), f32)
    v1 = 1.0 + 0.1 * jax.random.uniform(ks[9], (1, hidden_dim), f32)

    g2 = 1.0 + 0.1 * jax.random.normal(ks[10], (1, hidden_dim), f32)
    be2 = 0.1 * jax.random.normal(ks[11], (1, hidden_dim), f32)
    m2 = jnp.linspace(-0.1, 0.1, hidden_dim, dtype=f32).reshape(1, hidden_dim)
    v2 = jnp.linspace(0.9, 1.1, hidden_dim, dtype=f32).reshape(1, hidden_dim)

    return dict(
        w1=w1, b1=b1, g1=g1, be1=be1, m1=m1, v1=v1,
        w2=w2, b2=b2, g2=g2, be2=be2, m2=m2, v2=v2,
        w3=w3, b3=b3,
    )


def mlp_reference(x, p):
    """Plain-JAX reference (eval-mode PyTorch semantics)."""
    h = x
    h = h @ p["w1"] + p["b1"]
    h = (h - p["m1"]) / jnp.sqrt(p["v1"] + BN_EPS) * p["g1"] + p["be1"]
    h = jnp.maximum(h, 0.0)
    h = h @ p["w2"] + p["b2"]
    h = (h - p["m2"]) / jnp.sqrt(p["v2"] + BN_EPS) * p["g2"] + p["be2"]
    h = jnp.maximum(h, 0.0)
    return h @ p["w3"] + p["b3"]


if __name__ == "__main__":
    # num_layers=3, input_dim=16, hidden_dim=32, output_dim=8, batch of 64 rows.
    N, IN_DIM, HID, OUT_DIM = 64, 16, 32, 8

    key = jax.random.PRNGKey(0)
    kx, kp = jax.random.split(key)
    x = jax.random.normal(kx, (N, IN_DIM), jnp.float32)
    params = init_params(kp, IN_DIM, HID, OUT_DIM)

    ref = mlp_reference(x, params)

    # Exact f32 MXU-operand path (matches PyTorch eval-mode numerics).
    out_f32 = jax.block_until_ready(mlp_forward(x, params, compute_dtype=jnp.float32))
    assert out_f32.shape == (N, OUT_DIM)
    assert jnp.allclose(out_f32, ref, atol=1e-4, rtol=1e-4), "f32 mismatch vs reference"

    # Default path (bf16 MXU operands on v6e/v7x, f32 elsewhere; f32 accumulate/epilogue).
    out_auto = jax.block_until_ready(mlp_forward(x, params))
    assert out_auto.shape == (N, OUT_DIM)
    assert jnp.allclose(out_auto, ref, atol=5e-2, rtol=5e-2), "auto-dtype mismatch vs reference"

    print("KERNEL_OK")
</pallas_src>

<mosaic_0001>
module attributes {stable_mosaic.version = 11 : i64} {
  func.func @_mlp_kernel(%arg0: i32, %arg1: i32, %arg2: memref<64x16xf32, #tpu.memory_space<vmem>>, %arg3: memref<16x128xf32, #tpu.memory_space<vmem>>, %arg4: memref<1x128xf32, #tpu.memory_space<vmem>>, %arg5: memref<128x128xf32, #tpu.memory_space<vmem>>, %arg6: memref<1x128xf32, #tpu.memory_space<vmem>>, %arg7: memref<128x128xf32, #tpu.memory_space<vmem>>, %arg8: memref<1x128xf32, #tpu.memory_space<vmem>>, %arg9: memref<64x8xf32, #tpu.memory_space<vmem>>, %arg10: memref<64x128xf32, #tpu.memory_space<vmem>>, %arg11: memref<64x128xf32, #tpu.memory_space<vmem>>) attributes {dimension_semantics = [#tpu.dimension_semantics<parallel>, #tpu.dimension_semantics<arbitrary>], iteration_bounds = array<i64: 1, 1>, scalar_prefetch = 0 : i64, scratch_operands = 2 : i64, tpu.core_type = #tpu.core_type<tc>, window_params = [{transform_indices = @transform_0, window_bounds = array<i64: 64, 16>}, {pipeline_mode = #tpu.pipeline_mode<synchronous>, transform_indices = @transform_1, window_bounds = array<i64: 16, 128>}, {pipeline_mode = #tpu.pipeline_mode<synchronous>, transform_indices = @transform_2, window_bounds = array<i64: 1, 128>}, {transform_indices = @transform_3, window_bounds = array<i64: 128, 128>}, {pipeline_mode = #tpu.pipeline_mode<synchronous>, transform_indices = @transform_4, window_bounds = array<i64: 1, 128>}, {pipeline_mode = #tpu.pipeline_mode<synchronous>, transform_indices = @transform_5, window_bounds = array<i64: 128, 128>}, {pipeline_mode = #tpu.pipeline_mode<synchronous>, transform_indices = @transform_6, window_bounds = array<i64: 1, 128>}, {transform_indices = @transform_7, window_bounds = array<i64: 64, 8>}]} {
    %c0_i32 = arith.constant 0 : i32
    %0 = arith.cmpi eq, %arg1, %c0_i32 : i32
    %1 = arith.extui %0 : i1 to i32
    %c0_i32_0 = arith.constant 0 : i32
    %2 = arith.cmpi ne, %1, %c0_i32_0 : i32
    scf.if %2 {
      %c0_9 = arith.constant 0 : index
      %c0_10 = arith.constant 0 : index
      %15 = vector.load %arg2[%c0_9, %c0_10] : memref<64x16xf32, #tpu.memory_space<vmem>>, vector<64x16xf32>
      %c0_11 = arith.constant 0 : index
      %c0_12 = arith.constant 0 : index
      %16 = vector.load %arg3[%c0_11, %c0_12] : memref<16x128xf32, #tpu.memory_space<vmem>>, vector<16x128xf32>
      %cst_13 = arith.constant dense<0.000000e+00> : vector<64x128xf32>
      %17 = tpu.matmul %15, %16, %cst_13 {dimension_numbers = #tpu.dot_dimension_numbers<[1], [0], [0], [1], [0, 0, 1, 1], [], []>} : vector<64x16xf32>, vector<16x128xf32>, vector<64x128xf32> -> vector<64x128xf32>
      %c0_14 = arith.constant 0 : index
      %c0_15 = arith.constant 0 : index
      %18 = vector.load %arg4[%c0_14, %c0_15] : memref<1x128xf32, #tpu.memory_space<vmem>>, vector<1x128xf32>
      %19 = vector.broadcast %18 : vector<1x128xf32> to vector<64x128xf32>
      %20 = arith.addf %17, %19 : vector<64x128xf32>
      %cst_16 = arith.constant 0.000000e+00 : f32
      %21 = vector.broadcast %cst_16 : f32 to vector<64x128xf32>
      %22 = arith.maximumf %20, %21 : vector<64x128xf32>
      %c0_17 = arith.constant 0 : index
      %c0_18 = arith.constant 0 : index
      %23 = vector.load %arg10[%c0_17, %c0_18] : memref<64x128xf32, #tpu.memory_space<vmem>>, vector<64x128xf32>
      tpu.vector_store %arg10[%c0_17, %c0_18], %22 {strides = array<i32>} : memref<64x128xf32, #tpu.memory_space<vmem>>, vector<64x128xf32>,
      %cst_19 = arith.constant 0.000000e+00 : f32
      %24 = vector.broadcast %cst_19 : f32 to vector<64x128xf32>
      %c0_20 = arith.constant 0 : index
      %c0_21 = arith.constant 0 : index
      %25 = vector.load %arg11[%c0_20, %c0_21] : memref<64x128xf32, #tpu.memory_space<vmem>>, vector<64x128xf32>
      tpu.vector_store %arg11[%c0_20, %c0_21], %24 {strides = array<i32>} : memref<64x128xf32, #tpu.memory_space<vmem>>, vector<64x128xf32>,
    } else {
    }
    %c128_i32 = arith.constant 128 : i32
    %3 = arith.muli %arg1, %c128_i32 : i32
    %4 = tpu.assume_multiple %3, 128 : i32
    %c0 = arith.constant 0 : index
    %c0_1 = arith.constant 0 : index
    %5 = vector.load %arg11[%c0, %c0_1] : memref<64x128xf32, #tpu.memory_space<vmem>>, vector<64x128xf32>
    %c0_2 = arith.constant 0 : index
    %6 = arith.index_cast %4 : i32 to index
    %7 = vector.load %arg10[%c0_2, %6] : memref<64x128xf32, #tpu.memory_space<vmem>>, vector<64x128xf32>
    %c0_3 = arith.constant 0 : index
    %c0_4 = arith.constant 0 : index
    %8 = vector.load %arg5[%c0_3, %c0_4] : memref<128x128xf32, #tpu.memory_space<vmem>>, vector<128x128xf32>
    %cst = arith.constant dense<0.000000e+00> : vector<64x128xf32>
    %9 = tpu.matmul %7, %8, %cst {dimension_numbers = #tpu.dot_dimension_numbers<[1], [0], [0], [1], [0, 0, 1, 1], [], []>} : vector<64x128xf32>, vector<128x128xf32>, vector<64x128xf32> -> vector<64x128xf32>
    %10 = arith.addf %5, %9 : vector<64x128xf32>
    %c0_5 = arith.constant 0 : index
    %c0_6 = arith.constant 0 : index
    %11 = vector.load %arg11[%c0_5, %c0_6] : memref<64x128xf32, #tpu.memory_space<vmem>>, vector<64x128xf32>
    tpu.vector_store %arg11[%c0_5, %c0_6], %10 {strides = array<i32>} : memref<64x128xf32, #tpu.memory_space<vmem>>, vector<64x128xf32>,
    %c0_i32_7 = arith.constant 0 : i32
    %12 = arith.cmpi eq, %arg1, %c0_i32_7 : i32
    %13 = arith.extui %12 : i1 to i32
    %c0_i32_8 = arith.constant 0 : i32
    %14 = arith.cmpi ne, %13, %c0_i32_8 : i32
    scf.if %14 {
      %c0_9 = arith.constant 0 : index
      %c0_10 = arith.constant 0 : index
      %15 = vector.load %arg11[%c0_9, %c0_10] : memref<64x128xf32, #tpu.memory_space<vmem>>, vector<64x128xf32>
      %c0_11 = arith.constant 0 : index
      %c0_12 = arith.constant 0 : index
      %16 = vector.load %arg6[%c0_11, %c0_12] : memref<1x128xf32, #tpu.memory_space<vmem>>, vector<1x128xf32>
      %17 = vector.broadcast %16 : vector<1x128xf32> to vector<64x128xf32>
      %18 = arith.addf %15, %17 : vector<64x128xf32>
      %cst_13 = arith.constant 0.000000e+00 : f32
      %19 = vector.broadcast %cst_13 : f32 to vector<64x128xf32>
      %20 = arith.maximumf %18, %19 : vector<64x128xf32>
      %c0_14 = arith.constant 0 : index
      %c0_15 = arith.constant 0 : index
      %21 = vector.load %arg7[%c0_14, %c0_15] : memref<128x128xf32, #tpu.memory_space<vmem>>, vector<128x128xf32>
      %cst_16 = arith.constant dense<0.000000e+00> : vector<64x128xf32>
      %22 = tpu.matmul %20, %21, %cst_16 {dimension_numbers = #tpu.dot_dimension_numbers<[1], [0], [0], [1], [0, 0, 1, 1], [], []>} : vector<64x128xf32>, vector<128x128xf32>, vector<64x128xf32> -> vector<64x128xf32>
      %c0_17 = arith.constant 0 : index
      %c0_18 = arith.constant 0 : index
      %23 = vector.load %arg8[%c0_17, %c0_18] : memref<1x128xf32, #tpu.memory_space<vmem>>, vector<1x128xf32>
      %24 = vector.broadcast %23 : vector<1x128xf32> to vector<64x128xf32>
      %25 = arith.addf %22, %24 : vector<64x128xf32>
      %26 = vector.extract_strided_slice %25 {offsets = [0, 0], sizes = [64, 8], strides = [1, 1]} : vector<64x128xf32> to vector<64x8xf32>
      %c0_19 = arith.constant 0 : index
      %c0_20 = arith.constant 0 : index
      %27 = vector.load %arg9[%c0_19, %c0_20] : memref<64x8xf32, #tpu.memory_space<vmem>>, vector<64x8xf32>
      tpu.vector_store %arg9[%c0_19, %c0_20], %26 {strides = array<i32>} : memref<64x8xf32, #tpu.memory_space<vmem>>, vector<64x8xf32>,
    } else {
    }
    return
  }
  func.func @transform_0(%arg0: i32, %arg1: i32) -> (i32, i32) {
    %c0_i32 = arith.constant 0 : i32
    %c0_i32_0 = arith.constant 0 : i32
    return %arg0, %c0_i32 : i32, i32
  }
  func.func @transform_1(%arg0: i32, %arg1: i32) -> (i32, i32) {
    %c0_i32 = arith.constant 0 : i32
    %c0_i32_0 = arith.constant 0 : i32
    %c0_i32_1 = arith.constant 0 : i32
    return %c0_i32, %c0_i32_0 : i32, i32
  }
  func.func @transform_2(%arg0: i32, %arg1: i32) -> (i32, i32) {
    %c0_i32 = arith.constant 0 : i32
    %c0_i32_0 = arith.constant 0 : i32
    %c0_i32_1 = arith.constant 0 : i32
    return %c0_i32, %c0_i32_0 : i32, i32
  }
  func.func @transform_3(%arg0: i32, %arg1: i32) -> (i32, i32) {
    %c0_i32 = arith.constant 0 : i32
    %c0_i32_0 = arith.constant 0 : i32
    return %arg1, %c0_i32 : i32, i32
  }
  func.func @transform_4(%arg0: i32, %arg1: i32) -> (i32, i32) {
    %c0_i32 = arith.constant 0 : i32
    %c0_i32_0 = arith.constant 0 : i32
    %c0_i32_1 = arith.constant 0 : i32
    return %c0_i32, %c0_i32_0 : i32, i32
  }
  func.func @transform_5(%arg0: i32, %arg1: i32) -> (i32, i32) {
    %c0_i32 = arith.constant 0 : i32
    %c0_i32_0 = arith.constant 0 : i32
    %c0_i32_1 = arith.constant 0 : i32
    return %c0_i32, %c0_i32_0 : i32, i32
  }
  func.func @transform_6(%arg0: i32, %arg1: i32) -> (i32, i32) {
    %c0_i32 = arith.constant 0 : i32
    %c0_i32_0 = arith.constant 0 : i32
    %c0_i32_1 = arith.constant 0 : i32
    return %c0_i32, %c0_i32_0 : i32, i32
  }
  func.func @transform_7(%arg0: i32, %arg1: i32) -> (i32, i32) {
    %c0_i32 = arith.constant 0 : i32
    %c0_i32_0 = arith.constant 0 : i32
    return %arg0, %c0_i32 : i32, i32
  }
}

</mosaic_0001>

<bundles_post_ra>
// kernel: tpu_custom_call.1
= control target key start
LH: loop header
LB: loop body
LE: loop exit
PB: predicated region body
PF: predicated region fallthrough
CT: control target
= control target key end

     0   :  { %12 = vsyncpa [#allocation5], 0  ;;  %s914_s0 = inlined_call_operand.vmem [shape: f32[64,16], index: 0, kind: input, shape index: {}]   ;;  %s915_s1 = inlined_call_operand.vmem [shape: f32[16,128], index: 1, kind: input, shape index: {}]   ;;  %s916_s2 = inlined_call_operand.vmem [shape: f32[1,128], index: 2, kind: input, shape index: {}]   ;;  %s917_s3 = inlined_call_operand.hbm [shape: f32[128,128], index: 3, kind: input, shape index: {}]   ;;  %s918_s4 = inlined_call_operand.vmem [shape: f32[1,128], index: 4, kind: input, shape index: {}]   ;;  %s919_s5 = inlined_call_operand.hbm [shape: f32[128,128], index: 5, kind: input, shape index: {}]   ;;  %s920_s6 = inlined_call_operand.vmem [shape: f32[1,128], index: 6, kind: input, shape index: {}]   ;;  %s921_s7 = inlined_call_operand.vmem [shape: f32[64,8], index: 7, kind: output, shape index: {}]  }
   0x1   :  { %13 = vsyncpa [#allocation7], 0  ;;  %s785_s24 = smov [#allocation4]  }
   0x2   :  { %s25_s25 = sshll.u32 %s785_s24, 4  ;;  %s26_s25 = int_to_ptr.vmem [resolvable:$true] %s25_s25 }
   0x3   :  { %s749_s26 = scalar_lea.vmem %s26_s25, 2048  ;;  %p754_p1 = scmp.lt.s32.totalorder %s26_s25, %s26_s25 }
   0x4   :  { %p750_p0 = scmp.ne.s32.totalorder %s26_s25, %s749_s26  ;;  %p755_p2 = scmp.lt.s32.totalorder %s749_s26, %s749_s26 }
   0x6   :  { %p756_p3 = por %p755_p2, %p754_p1 }
   0x8   :  { %p757_p4 = pnand %p756_p3, %p750_p0 }
   0xa   :  { %760 = shalt.err (!%p757_p4)
}
   0xb   :  { %s786_s27 = smov 128   ;;  %s787_s28 = smov 8  }
   0xc   :  { %31 = dma.hbm_to_vmem [thread:$0]  %s917_s3, 2048, %s26_s25, [#allocation5], %s786_s27, %s786_s27, %s787_s28  }
   0xd   :  { %s788_s8 = smov [#allocation6]  }
   0xe   :  { %s39_s9 = sshll.u32 %s788_s8, 4  ;;  %s40_s9 = int_to_ptr.vmem [resolvable:$true] %s39_s9 }
   0xf   :  { %s769_s10 = scalar_lea.vmem %s40_s9, 2048  ;;  %p774_p6 = scmp.lt.s32.totalorder %s40_s9, %s40_s9 }
  0x10   :  { %p770_p5 = scmp.ne.s32.totalorder %s40_s9, %s769_s10  ;;  %p775_p7 = scmp.lt.s32.totalorder %s769_s10, %s769_s10 }
  0x12   :  { %p776_p8 = por %p775_p7, %p774_p6 }
  0x14   :  { %p777_p9 = pnand %p776_p8, %p770_p5 }
  0x16   :  { %780 = shalt.err (!%p777_p9)
}
  0x17   :  { %45 = dma.hbm_to_vmem [thread:$0]  %s919_s5, 2048, %s40_s9, [#allocation7], %s786_s27, %s786_s27, %s787_s28  }
  0x18   :  { %781 = dma.done.wait [#allocation5], 2048  }
  0x19   :  { %782 = vsyncadd [#allocation5], 4294965248 }
  0x1a   :  { %783 = dma.done.wait [#allocation7], 2048  }
  0x1b   :  { %784 = vsyncadd [#allocation7], 4294965248  ;;  %vm75_vm0 = vcmask 130048   ;;  %v67_v0 = vld [vmem:[%s915_s1 + $0x8] sm:$0xff]  ;;  %v66_v1 = vld [vmem:[%s915_s1] sm:$0xff]  ;;  %vm548_vm1 = vcmask 64512  }
  0x1c   :  { %v58_v2 = vld [vmem:[%s914_s0] sm:$0xff]  ;;  %633 = vmatprep.subr.mxu0 %v67_v0  ;;  %v59_v3 = vld [vmem:[%s914_s0 + $0x8] sm:$0xff]  ;;  %v60_v4 = vld [vmem:[%s914_s0 + $0x10] sm:$0xff] }
  0x1d   :  { %637 = vmatprep.mubr.msk.f32.mxu0 %vm75_vm0, %v58_v2  ;;  %634 = vmatpush3.msra.mxu0 %v67_v0  ;;  %v264_v5 = vld [vmem:[#allocation4 + $0x78] sm:$0xff]  ;;  %v263_v6 = vld [vmem:[#allocation4 + $0x70] sm:$0xff]  ;;  %v262_v7 = vld [vmem:[#allocation4 + $0x68] sm:$0xff] }
  0x1e   :  { %635 = vmatprep.subr.mxu0 %v66_v1  ;;  %649 = vmatprep.subr.mxu1 %v264_v5  ;;  %v61_v8 = vld [vmem:[%s914_s0 + $0x18] sm:$0xff]  ;;  %v62_v9 = vld [vmem:[%s914_s0 + $0x20] sm:$0xff]  ;;  %v63_v12 = vld [vmem:[%s914_s0 + $0x28] sm:$0xff] }
  0x1f   :  { %636 = vmatpush3.msra.mxu0 %v66_v1  ;;  %650 = vmatpush3.msra.mxu1 %v264_v5  ;;  %v261_v10 = vld [vmem:[#allocation4 + $0x60] sm:$0xff]  ;;  %v260_v11 = vld [vmem:[#allocation4 + $0x58] sm:$0xff]  ;;  %v64_v13 = vld [vmem:[%s914_s0 + $0x30] sm:$0xff] }
  0x20   :  { %638 = vmatmul.mubr.msk.f32.vlgmr.msra.gmra.mxu0 %vm75_vm0, %v59_v3  ;;  %651 = vmatprep.subr.mxu1 %v263_v6  ;;  %v259_v14 = vld [vmem:[#allocation4 + $0x50] sm:$0xff]  ;;  %v258_v15 = vld [vmem:[#allocation4 + $0x48] sm:$0xff]  ;;  %v65_v16 = vld [vmem:[%s914_s0 + $0x38] sm:$0xff] }
  0x21   :  { %640 = vmatprep.mubr.msk.f32.mxu0 %vm75_vm0, %v60_v4  ;;  %652 = vmatpush3.msra.mxu1 %v263_v6  ;;  %v257_v17 = vld [vmem:[#allocation4 + $0x40] sm:$0xff]  ;;  %v256_v18 = vld [vmem:[#allocation4 + $0x38] sm:$0xff]  ;;  %v255_v19 = vld [vmem:[#allocation4 + $0x30] sm:$0xff] }
  0x22   :  { %653 = vmatprep.subr.mxu1 %v262_v7  ;;  %v254_v20 = vld [vmem:[#allocation4 + $0x28] sm:$0xff]  ;;  %v253_v21 = vld [vmem:[#allocation4 + $0x20] sm:$0xff]  ;;  %v252_v22 = vld [vmem:[#allocation4 + $0x18] sm:$0xff] }
  0x23   :  { %654 = vmatpush3.msra.mxu1 %v262_v7  ;;  %v251_v23 = vld [vmem:[#allocation4 + $0x10] sm:$0xff]  ;;  %v250_v24 = vld [vmem:[#allocation4 + $0x8] sm:$0xff]  ;;  %v249_v25 = vld [vmem:[#allocation4] sm:$0xff] }
  0x24   :  { %641 = vmatmul.mubr.msk.f32.gmra.mxu0 %vm75_vm0, %v61_v8  ;;  %655 = vmatprep.subr.mxu1 %v261_v10  ;;  %v435_v26 = vld [vmem:[#allocation6 + $0x78] sm:$0xff]  ;;  %v434_v27 = vld [vmem:[#allocation6 + $0x70] sm:$0xff]  ;;  %v433_v28 = vld [vmem:[#allocation6 + $0x68] sm:$0xff] }
  0x25   :  { %643 = vmatprep.mubr.msk.f32.mxu0 %vm75_vm0, %v62_v9  ;;  %656 = vmatpush3.msra.mxu1 %v261_v10  ;;  %v432_v29 = vld [vmem:[#allocation6 + $0x60] sm:$0xff]  ;;  %v431_v30 = vld [vmem:[#allocation6 + $0x58] sm:$0xff]  ;;  %v430_v31 = vld [vmem:[#allocation6 + $0x50] sm:$0xff] }
  0x26   :  { %657 = vmatprep.subr.mxu1 %v260_v11  ;;  %693 = vmatprep.subr.mxu0 %v435_v26  ;;  %v429_v32 = vld [vmem:[#allocation6 + $0x48] sm:$0xff]  ;;  %v428_v33 = vld [vmem:[#allocation6 + $0x40] sm:$0xff]  ;;  %v427_v34 = vld [vmem:[#allocation6 + $0x38] sm:$0xff] }
  0x27   :  { %658 = vmatpush3.msra.mxu1 %v260_v11  ;;  %694 = vmatpush3.msra.mxu0 %v435_v26  ;;  %v426_v35 = vld [vmem:[#allocation6 + $0x30] sm:$0xff]  ;;  %v425_v36 = vld [vmem:[#allocation6 + $0x28] sm:$0xff]  ;;  %v424_v37 = vld [vmem:[#allocation6 + $0x20] sm:$0xff] }
  0x28   :  { %644 = vmatmul.mubr.msk.f32.gmra.mxu0 %vm75_vm0, %v63_v12  ;;  %659 = vmatprep.subr.mxu1 %v259_v14  ;;  %v564_v38 = vld [vmem:[%s916_s2] ss:$0 sm:$0xff]  ;;  %v423_v63 = vld [vmem:[#allocation6 + $0x18] sm:$0xff]  ;;  %v422_v0 = vld [vmem:[#allocation6 + $0x10] sm:$0xff] }
  0x29   :  { %646 = vmatprep.mubr.msk.f32.mxu0 %vm75_vm0, %v64_v13  ;;  %660 = vmatpush3.msra.mxu1 %v259_v14  ;;  %v421_v1 = vld [vmem:[#allocation6 + $0x8] sm:$0xff]  ;;  %v420_v2 = vld [vmem:[#allocation6] sm:$0xff] }
  0x2a   :  { %661 = vmatprep.subr.mxu1 %v258_v15  ;;  %695 = vmatprep.subr.mxu0 %v434_v27  ;;  %v573_v3 = vld [vmem:[%s918_s4] ss:$0 sm:$0xff] }
  0x2b   :  { %662 = vmatpush3.msra.mxu1 %v258_v15  ;;  %696 = vmatpush3.msra.mxu0 %v434_v27 }
  0x2c   :  { %647 = vmatmul.mubr.msk.f32.gmra.mxu0 %vm75_vm0, %v65_v16  ;;  %663 = vmatprep.subr.mxu1 %v257_v17 }
  0x2d   :  { %664 = vmatpush3.msra.mxu1 %v257_v17  ;;  %697 = vmatprep.subr.mxu0 %v433_v28 }
  0x2e   :  { %665 = vmatprep.subr.mxu1 %v256_v18  ;;  %698 = vmatpush3.msra.mxu0 %v433_v28  ;;  %v574_v28 = vld [vmem:[%s920_s6] ss:$0 sm:$0xff] }
  0x2f   :  { %666 = vmatpush3.msra.mxu1 %v256_v18  ;;  %699 = vmatprep.subr.mxu0 %v432_v29 }
  0x30   :  { %667 = vmatprep.subr.mxu1 %v255_v19  ;;  %700 = vmatpush3.msra.mxu0 %v432_v29 }
  0x31   :  { %668 = vmatpush3.msra.mxu1 %v255_v19  ;;  %701 = vmatprep.subr.mxu0 %v431_v30 }
  0x32   :  { %669 = vmatprep.subr.mxu1 %v254_v20  ;;  %702 = vmatpush3.msra.mxu0 %v431_v30 }
  0x33   :  { %670 = vmatpush3.msra.mxu1 %v254_v20  ;;  %703 = vmatprep.subr.mxu0 %v430_v31 }
  0x34   :  { %671 = vmatprep.subr.mxu1 %v253_v21  ;;  %704 = vmatpush3.msra.mxu0 %v430_v31 }
  0x35   :  { %672 = vmatpush3.msra.mxu1 %v253_v21  ;;  %705 = vmatprep.subr.mxu0 %v429_v32 }
  0x36   :  { %673 = vmatprep.subr.mxu1 %v252_v22  ;;  %706 = vmatpush3.msra.mxu0 %v429_v32 }
  0x37   :  { %674 = vmatpush3.msra.mxu1 %v252_v22  ;;  %707 = vmatprep.subr.mxu0 %v428_v33 }
  0x38   :  { %675 = vmatprep.subr.mxu1 %v251_v23  ;;  %708 = vmatpush3.msra.mxu0 %v428_v33 }
  0x39   :  { %676 = vmatpush3.msra.mxu1 %v251_v23  ;;  %709 = vmatprep.subr.mxu0 %v427_v34 }
  0x3a   :  { %677 = vmatprep.subr.mxu1 %v250_v24  ;;  %710 = vmatpush3.msra.mxu0 %v427_v34 }
  0x3b   :  { %678 = vmatpush3.msra.mxu1 %v250_v24  ;;  %711 = vmatprep.subr.mxu0 %v426_v35 }
  0x3c   :  { %679 = vmatprep.subr.mxu1 %v249_v25  ;;  %712 = vmatpush3.msra.mxu0 %v426_v35 }
  0x3d   :  { %680 = vmatpush3.msra.mxu1 %v249_v25  ;;  %713 = vmatprep.subr.mxu0 %v425_v36 }
  0x3e   :  { %714 = vmatpush3.msra.mxu0 %v425_v36 }
  0x3f   :  { %715 = vmatprep.subr.mxu0 %v424_v37 }
  0x40   :  { %716 = vmatpush3.msra.mxu0 %v424_v37 }
  0x41   :  { %717 = vmatprep.subr.mxu0 %v423_v63 }
  0x42   :  { %718 = vmatpush3.msra.mxu0 %v423_v63 }
  0x43   :  { %719 = vmatprep.subr.mxu0 %v422_v0 }
  0x44   :  { %720 = vmatpush3.msra.mxu0 %v422_v0 }
  0x45   :  { %721 = vmatprep.subr.mxu0 %v421_v1 }
  0x46   :  { %722 = vmatpush3.msra.mxu0 %v421_v1 }
  0x47   :  { %723 = vmatprep.subr.mxu0 %v420_v2 }
  0x48   :  { %724 = vmatpush3.msra.mxu0 %v420_v2 }
  0xe0   :  { %v639_v39 = vpop.f32.mrf.mxu0 }
  0xe1   :  { %v172_v40 = vadd.f32 %v639_v39, %v564_v38 }
  0xe2   :  { %v166_v41 = vpop.f32.mrf.mxu0 }
  0xe3   :  { %v167_v42 = vadd.f32 %v564_v38, %v166_v41  ;;  %v206_v45 = vmax.f32 %v172_v40, 0.0 }
  0xe4   :  { %v642_v43 = vpop.f32.mrf.mxu0 }
  0xe5   :  { %v205_v44 = vmax.f32 %v167_v42, 0.0  ;;  %v182_v46 = vadd.f32 %v642_v43, %v564_v38 }
  0xe6   :  { %v176_v47 = vpop.f32.mrf.mxu0 }
  0xe7   :  { %v177_v48 = vadd.f32 %v564_v38, %v176_v47  ;;  %681 = vmatprep.mubr.f32.mxu1 %v205_v44  ;;  %v208_v51 = vmax.f32 %v182_v46, 0.0 }
  0xe8   :  { %v645_v49 = vpop.f32.mrf.mxu0  ;;  %682 = vmatmul.mubr.f32.vlgmr.msra.gmra.mxu1 %v206_v45 }
  0xe9   :  { %v207_v50 = vmax.f32 %v177_v48, 0.0  ;;  %v192_v52 = vadd.f32 %v645_v49, %v564_v38 }
  0xea   :  { %v186_v53 = vpop.f32.mrf.mxu0 }
  0xeb   :  { %v187_v54 = vadd.f32 %v564_v38, %v186_v53  ;;  %684 = vmatprep.mubr.f32.mxu1 %v207_v50  ;;  %v210_v57 = vmax.f32 %v192_v52, 0.0 }
  0xec   :  { %v648_v55 = vpop.f32.mrf.mxu0  ;;  %685 = vmatmul.mubr.f32.gmra.mxu1 %v208_v51 }
  0xed   :  { %v209_v56 = vmax.f32 %v187_v54, 0.0  ;;  %v202_v58 = vadd.f32 %v648_v55, %v564_v38 }
  0xee   :  { %v196_v59 = vpop.f32.mrf.mxu0 }
  0xef   :  { %v197_v60 = vadd.f32 %v564_v38, %v196_v59  ;;  %687 = vmatprep.mubr.f32.mxu1 %v209_v56  ;;  %v212_v62 = vmax.f32 %v202_v58, 0.0 }
  0xf0   :  { %688 = vmatmul.mubr.f32.gmra.mxu1 %v210_v57 }
  0xf1   :  { %v211_v61 = vmax.f32 %v197_v60, 0.0 }
  0xf3   :  { %690 = vmatprep.mubr.f32.mxu1 %v211_v61 }
  0xf4   :  { %691 = vmatmul.mubr.f32.gmra.mxu1 %v212_v62 }
 0x1a8   :  { %v683_v4 = vpop.f32.mrf.mxu1 }
 0x1a9   :  { %v405_v5 = vadd.f32 %v683_v4, %v573_v3 }
 0x1aa   :  { %v331_v6 = vpop.f32.mrf.mxu1 }
 0x1ab   :  { %v404_v7 = vadd.f32 %v573_v3, %v331_v6  ;;  %v413_v10 = vmax.f32 %v405_v5, 0.0 }
 0x1ac   :  { %v686_v8 = vpop.f32.mrf.mxu1 }
 0x1ad   :  { %v412_v9 = vmax.f32 %v404_v7, 0.0  ;;  %v407_v11 = vadd.f32 %v686_v8, %v573_v3 }
 0x1ae   :  { %v341_v12 = vpop.f32.mrf.mxu1 }
 0x1af   :  { %v406_v13 = vadd.f32 %v573_v3, %v341_v12  ;;  %725 = vmatprep.mubr.f32.mxu0 %v412_v9  ;;  %v415_v16 = vmax.f32 %v407_v11, 0.0 }
 0x1b0   :  { %v689_v14 = vpop.f32.mrf.mxu1  ;;  %726 = vmatmul.mubr.f32.vlgmr.msra.gmra.mxu0 %v413_v10 }
 0x1b1   :  { %v414_v15 = vmax.f32 %v406_v13, 0.0  ;;  %v409_v17 = vadd.f32 %v689_v14, %v573_v3 }
 0x1b2   :  { %v351_v18 = vpop.f32.mrf.mxu1 }
 0x1b3   :  { %v408_v19 = vadd.f32 %v573_v3, %v351_v18  ;;  %728 = vmatprep.mubr.f32.mxu0 %v414_v15  ;;  %v417_v22 = vmax.f32 %v409_v17, 0.0 }
 0x1b4   :  { %v692_v20 = vpop.f32.mrf.mxu1  ;;  %729 = vmatmul.mubr.f32.gmra.mxu0 %v415_v16 }
 0x1b5   :  { %v416_v21 = vmax.f32 %v408_v19, 0.0  ;;  %v411_v23 = vadd.f32 %v692_v20, %v573_v3 }
 0x1b6   :  { %v361_v24 = vpop.f32.mrf.mxu1 }
 0x1b7   :  { %v410_v25 = vadd.f32 %v573_v3, %v361_v24  ;;  %731 = vmatprep.mubr.f32.mxu0 %v416_v21  ;;  %v419_v27 = vmax.f32 %v411_v23, 0.0 }
 0x1b8   :  { %732 = vmatmul.mubr.f32.gmra.mxu0 %v417_v22 }
 0x1b9   :  { %v418_v26 = vmax.f32 %v410_v25, 0.0 }
 0x1bb   :  { %734 = vmatprep.mubr.f32.mxu0 %v418_v26 }
 0x1bc   :  { %735 = vmatmul.mubr.f32.gmra.mxu0 %v419_v27 }
 0x270   :  { %v727_v29 = vpop.f32.mrf.mxu0 }
 0x271   :  { %v515_v30 = vadd.f32 %v727_v29, %v574_v28 }
 0x272   :  { %v509_v31 = vpop.f32.mrf.mxu0 }
 0x273   :  { %550 = vst.msk [vmem:[%s921_s7 + $0x8] sm:$0xff] %vm548_vm1, %v515_v30  ;;  %v510_v32 = vadd.f32 %v574_v28, %v509_v31 }
 0x274   :  { %v730_v33 = vpop.f32.mrf.mxu0 }
 0x275   :  { %549 = vst.msk [vmem:[%s921_s7] sm:$0xff] %vm548_vm1, %v510_v32  ;;  %v525_v34 = vadd.f32 %v730_v33, %v574_v28 }
 0x276   :  { %v519_v35 = vpop.f32.mrf.mxu0 }
 0x277   :  { %552 = vst.msk [vmem:[%s921_s7 + $0x18] sm:$0xff] %vm548_vm1, %v525_v34  ;;  %v520_v36 = vadd.f32 %v574_v28, %v519_v35 }
 0x278   :  { %v733_v37 = vpop.f32.mrf.mxu0 }
 0x279   :  { %551 = vst.msk [vmem:[%s921_s7 + $0x10] sm:$0xff] %vm548_vm1, %v520_v36  ;;  %v535_v38 = vadd.f32 %v733_v37, %v574_v28 }
 0x27a   :  { %v529_v39 = vpop.f32.mrf.mxu0 }
 0x27b   :  { %554 = vst.msk [vmem:[%s921_s7 + $0x28] sm:$0xff] %vm548_vm1, %v535_v38  ;;  %v530_v40 = vadd.f32 %v574_v28, %v529_v39 }
 0x27c   :  { %v736_v41 = vpop.f32.mrf.mxu0 }
 0x27d   :  { %553 = vst.msk [vmem:[%s921_s7 + $0x20] sm:$0xff] %vm548_vm1, %v530_v40  ;;  %v545_v42 = vadd.f32 %v736_v41, %v574_v28 }
 0x27e   :  { %v539_v43 = vpop.f32.mrf.mxu0 }
 0x27f   :  { %556 = vst.msk [vmem:[%s921_s7 + $0x38] sm:$0xff] %vm548_vm1, %v545_v42  ;;  %v540_v44 = vadd.f32 %v574_v28, %v539_v43 }
 0x281   :  { %555 = vst.msk [vmem:[%s921_s7 + $0x30] sm:$0xff] %vm548_vm1, %v540_v44 }
 0x282   :  { %561 = vsyncpa [#allocation5], 1 }
 0x283   :  { %562 = vsyncpa [#allocation7], 1 }

</bundles_post_ra>
